<compile_context>
chip_gen: v7x
topology: tpu7x:2x2x1
jax: 0.10.0
libtpu: 0.0.40
codegen_flags: <defaults>
</compile_context>

<pallas_src>
import jax
import jax.numpy as jnp
import jax.scipy.linalg as jsla
from jax.experimental import pallas as pl
from jax.experimental.pallas import tpu as pltpu

# ------------------------- problem sizes / constants -------------------------
X_DIM    = 8
N_INEQ   = 4
N_EQ     = 2
N_DIM    = X_DIM + N_INEQ            # 12  (state + slack)
M_CON    = N_EQ + N_INEQ             # 6   (rows of F)
PARM_DIM = X_DIM + N_EQ + N_INEQ     # 14
BATCH    = 64

NUM_STEPS = 3
GAMMA     = 0.5                      # ADMMSolver sets self.gamma = 1/2
ALPHA     = 0.5
BOUND     = 1000.0                   # state_slack_bound

IN_ROWS    = N_DIM + PARM_DIM        # 26  rows of the batch input slab
CONST_COLS = N_DIM + PARM_DIM + 2    # 28  lanes of the constant slab


# --------------------------------- kernel ------------------------------------
def admm_kernel(inp_ref, const_ref, x_out_ref, cnv_out_ref):
    inp = inp_ref[...]           # (IN_ROWS, B)  = [xs0 ; parms], batch-minor
    C   = const_ref[...]         # (N_DIM, CONST_COLS) = [P^T | Qmap^T | lb | ub]

    xs0   = inp[:N_DIM, :]                       # (N_DIM, B)   initial [x ; 0]
    parms = inp[N_DIM:, :]                       # (PARM_DIM, B)

    PT    = C[:, :N_DIM]                         # (N_DIM, N_DIM)
    QmapT = C[:, N_DIM:N_DIM + PARM_DIM]         # (N_DIM, PARM_DIM)
    lb    = C[:, N_DIM + PARM_DIM:N_DIM + PARM_DIM + 1]   # (N_DIM, 1)
    ub    = C[:, N_DIM + PARM_DIM + 1:]                    # (N_DIM, 1)

    def mm(a, b):
        return jnp.dot(a, b, preferred_element_type=jnp.float32)

    # Loop-invariant affine part of the prox (zeta + its propagation): 1 matmul.
    q = mm(QmapT, parms)                          # (N_DIM, B)

    # Hoist box-bound lane broadcasts out of the unrolled loop.
    lb_b = jnp.broadcast_to(lb, xs0.shape)
    ub_b = jnp.broadcast_to(ub, xs0.shape)

    y_k   = xs0
    w_k   = jnp.zeros_like(xs0)
    x_k   = xs0
    y_old = y_k
    for _ in range(NUM_STEPS):
        y_old = y_k
        # ProxObjectivePlusEqualityConstraint, folded:  prox(v) = P^T v + q
        x_k = mm(PT, y_k - w_k) + q
        # Relaxation step; ALPHA == 0.5 makes xA == x_k exactly.
        if abs(2.0 * ALPHA - 1.0) > 1e-12:
            xA = 2.0 * ALPHA * x_k + (1.0 - 2.0 * ALPHA) * y_k
        else:
            xA = x_k
        t = xA + w_k
        # ProxBoxConstraint == clip (ub >= lb always holds here).
        y_k = jnp.minimum(jnp.maximum(t, lb_b), ub_b)
        w_k = t - y_k                              # == w_k + xA - y_k

    r_gap = x_k - y_k
    s_gap = y_k - y_old
    # Two lane-dense whole-ref stores (no in-kernel concat).
    x_out_ref[...]   = x_k
    cnv_out_ref[...] = r_gap * r_gap + s_gap * s_gap


def admm_solver_pallas(x0, parms, Pmat, Qmap, bounds):
    """x0: (B, X_DIM), parms: (B, PARM_DIM). Returns (x_k, cnv_gap), each (B, N_DIM)."""
    batch = x0.shape[0]
    b_pad = max(128, ((batch + 127) // 128) * 128)   # lane-dense padded batch

    # One batch-minor input slab; slack rows [X_DIM:N_DIM] stay zero from init.
    inp = jnp.zeros((IN_ROWS, b_pad), jnp.float32)
    inp = inp.at[:X_DIM, :batch].set(x0.T.astype(jnp.float32))
    inp = inp.at[N_DIM:, :batch].set(parms.T.astype(jnp.float32))

    # One constant slab: [P^T | Qmap^T | lb_col | ub_col]  -> (N_DIM, CONST_COLS)
    C = jnp.concatenate(
        [Pmat.T, Qmap.T, bounds[0:1, :].T, bounds[1:2, :].T], axis=1
    ).astype(jnp.float32)

    x_out, cnv_out = pl.pallas_call(
        admm_kernel,
        out_shape=(jax.ShapeDtypeStruct((N_DIM, b_pad), jnp.float32),
                   jax.ShapeDtypeStruct((N_DIM, b_pad), jnp.float32)),
        grid_spec=pltpu.PrefetchScalarGridSpec(
            num_scalar_prefetch=0,
            grid=(1,),
            in_specs=[
                pl.BlockSpec((IN_ROWS, b_pad), lambda i: (0, 0)),
                pl.BlockSpec((N_DIM, CONST_COLS), lambda i: (0, 0)),
            ],
            out_specs=[
                pl.BlockSpec((N_DIM, b_pad), lambda i: (0, 0)),
                pl.BlockSpec((N_DIM, b_pad), lambda i: (0, 0)),
            ],
        ),
    )(inp, C)
    return x_out[:, :batch].T, cnv_out[:, :batch].T


# -------------- pure-JAX reference (original, un-folded math) ----------------
def admm_ref(xs0, ppad, c, JF_T, Rr_inv, Qr_T, Md, Hf, Kmat, lb, ub):
    def prox_obj_eq(v):
        Fx = v @ JF_T - c
        b = -Fx + v @ JF_T
        zeta = (b @ Rr_inv) @ Qr_T
        fg = v @ Hf + ppad
        zq = ((v - zeta) @ Md - (GAMMA / 2.0) * fg) @ Kmat
        return zq + zeta

    def prox_box(v):
        return lb + jnp.maximum(ub - lb - jnp.maximum(ub - v, 0.0), 0.0)

    y_k = xs0
    w_k = jnp.zeros_like(xs0)
    x_k = xs0
    cnv = jnp.zeros_like(xs0)
    for _ in range(NUM_STEPS):
        y_old = y_k
        x_k = prox_obj_eq(y_k - w_k)
        xA = 2.0 * ALPHA * x_k + (1.0 - 2.0 * ALPHA) * y_k
        y_k = prox_box(xA + w_k)
        w_k = w_k + xA - y_k
        cnv = (x_k - y_k) ** 2 + (y_k - y_old) ** 2
    return x_k, cnv


# ----------------------------------- main -------------------------------------
if __name__ == "__main__":
    key = jax.random.PRNGKey(0)
    k1, k2, k3, k4, k5 = jax.random.split(key, 5)

    # Deterministic problem data (the "weights" implied by f_obj / F_eq / F_ineq).
    Bq   = 0.3 * jax.random.normal(k1, (X_DIM, X_DIM), dtype=jnp.float32)
    Qmat = Bq @ Bq.T + 0.5 * jnp.eye(X_DIM, dtype=jnp.float32)   # symmetric PD
    A    = jax.random.normal(k2, (N_EQ, X_DIM), dtype=jnp.float32)
    G    = jax.random.normal(k3, (N_INEQ, X_DIM), dtype=jnp.float32)

    # JF of F(xs, parms) = [A x - b_eq ; G x - h + s]  wrt xs = [x ; s]
    JF = jnp.zeros((M_CON, N_DIM), dtype=jnp.float32)
    JF = JF.at[:N_EQ, :X_DIM].set(A)
    JF = JF.at[N_EQ:, :X_DIM].set(G)
    JF = JF.at[N_EQ:, X_DIM:].set(jnp.eye(N_INEQ, dtype=jnp.float32))

    # Hessian of f wrt xs (block-diag, slack part is zero)
    Hf = jnp.zeros((N_DIM, N_DIM), dtype=jnp.float32).at[:X_DIM, :X_DIM].set(Qmat)

    # Glue: constant prefactoring of ProxObjectivePlusEqualityConstraint
    Qc, Rc = jnp.linalg.qr(JF.T, mode="complete")     # Qc (n,n), Rc (n,m)
    Rr = Rc[:M_CON, :]                                # (m, m) upper-triangular
    Qr = Qc[:, :M_CON]                                # (n, m)
    Qn = Qc[:, M_CON:]                                # (n, n-m)
    Rr_inv = jsla.solve_triangular(Rr, jnp.eye(M_CON, dtype=jnp.float32),
                                   lower=False)       # folds solve_triangular(Rr^T, .)
    Md = (GAMMA / 2.0) * jnp.eye(N_DIM, dtype=jnp.float32) + Hf
    QTMdQ = Qn.T @ Md @ Qn                            # SPD -> Cholesky-solvable
    Lcho = jnp.linalg.cholesky(QTMdQ)
    Kmat = Qn @ jsla.cho_solve((Lcho, True), Qn.T)    # folds Lcho fwd/back solves

    JF_T = JF.T
    Qr_T = Qr.T

    # ---- algebraic fold of the prox (all constant, done once in glue) -------
    # prox(v) = v @ Pmat + parms @ Qmap    (row-vector form; kernel uses transposes)
    Pmat = (Md - (GAMMA / 2.0) * Hf) @ Kmat                         # (n, n)
    Zmat = Rr_inv @ Qr_T                                            # zeta = c @ Zmat
    Zq   = Zmat @ (jnp.eye(N_DIM, dtype=jnp.float32) - Md @ Kmat)   # c -> q
    Wmat = -(GAMMA / 2.0) * Kmat                                    # ppad -> q
    Qmap = jnp.concatenate([Wmat[:X_DIM, :], Zq], axis=0)           # (PARM_DIM, n)

    # Box-prox bounds: x in [-BOUND, BOUND], slack in [0, BOUND]
    lb = jnp.concatenate([-BOUND * jnp.ones((1, X_DIM), jnp.float32),
                          jnp.zeros((1, N_INEQ), jnp.float32)], axis=-1)
    ub = BOUND * jnp.ones((1, N_DIM), dtype=jnp.float32)
    bounds = jnp.concatenate([lb, ub], axis=0)                      # (2, n)

    # Inputs to ADMMSolver.forward
    x0    = jax.random.normal(k4, (BATCH, X_DIM), dtype=jnp.float32)
    parms = jax.random.normal(k5, (BATCH, PARM_DIM), dtype=jnp.float32)

    x_k, cnv_gap = jax.block_until_ready(
        admm_solver_pallas(x0, parms, Pmat.astype(jnp.float32),
                           Qmap.astype(jnp.float32), bounds))

    # Reference uses the original, un-folded math (validates the fold too).
    xs0  = jnp.concatenate([x0, jnp.zeros((BATCH, N_INEQ), jnp.float32)], axis=-1)
    ppad = jnp.concatenate([parms[:, :X_DIM],
                            jnp.zeros((BATCH, N_INEQ), jnp.float32)], axis=-1)
    c = parms[:, X_DIM:]
    x_ref, cnv_ref = admm_ref(xs0, ppad, c, JF_T, Rr_inv, Qr_T,
                              Md, Hf, Kmat.astype(jnp.float32), lb, ub)

    assert x_k.shape == (BATCH, N_DIM) and cnv_gap.shape == (BATCH, N_DIM)
    assert jnp.allclose(x_k, x_ref, atol=2e-3, rtol=2e-3)
    assert jnp.allclose(cnv_gap, cnv_ref, atol=2e-3, rtol=2e-3)

    print("KERNEL_OK")
</pallas_src>

<mosaic_0001>
module attributes {stable_mosaic.version = 11 : i64} {
  func.func @admm_kernel(%arg0: i32, %arg1: memref<26x128xf32, #tpu.memory_space<vmem>>, %arg2: memref<12x28xf32, #tpu.memory_space<vmem>>, %arg3: memref<12x128xf32, #tpu.memory_space<vmem>>, %arg4: memref<12x128xf32, #tpu.memory_space<vmem>>) attributes {dimension_semantics = [#tpu.dimension_semantics<arbitrary>], iteration_bounds = array<i64: 1>, scalar_prefetch = 0 : i64, scratch_operands = 0 : i64, tpu.core_type = #tpu.core_type<tc>, window_params = [{pipeline_mode = #tpu.pipeline_mode<synchronous>, transform_indices = @transform_0, window_bounds = array<i64: 26, 128>}, {pipeline_mode = #tpu.pipeline_mode<synchronous>, transform_indices = @transform_1, window_bounds = array<i64: 12, 28>}, {pipeline_mode = #tpu.pipeline_mode<synchronous>, transform_indices = @transform_2, window_bounds = array<i64: 12, 128>}, {pipeline_mode = #tpu.pipeline_mode<synchronous>, transform_indices = @transform_3, window_bounds = array<i64: 12, 128>}]} {
    %c0 = arith.constant 0 : index
    %c0_0 = arith.constant 0 : index
    %0 = vector.load %arg1[%c0, %c0_0] : memref<26x128xf32, #tpu.memory_space<vmem>>, vector<26x128xf32>
    %c0_1 = arith.constant 0 : index
    %c0_2 = arith.constant 0 : index
    %1 = vector.load %arg2[%c0_1, %c0_2] : memref<12x28xf32, #tpu.memory_space<vmem>>, vector<12x28xf32>
    %2 = vector.extract_strided_slice %0 {offsets = [0, 0], sizes = [12, 128], strides = [1, 1]} : vector<26x128xf32> to vector<12x128xf32>
    %3 = vector.extract_strided_slice %0 {offsets = [12, 0], sizes = [14, 128], strides = [1, 1]} : vector<26x128xf32> to vector<14x128xf32>
    %4 = vector.extract_strided_slice %1 {offsets = [0, 0], sizes = [12, 12], strides = [1, 1]} : vector<12x28xf32> to vector<12x12xf32>
    %5 = vector.extract_strided_slice %1 {offsets = [0, 12], sizes = [12, 14], strides = [1, 1]} : vector<12x28xf32> to vector<12x14xf32>
    %6 = vector.extract_strided_slice %1 {offsets = [0, 26], sizes = [12, 1], strides = [1, 1]} : vector<12x28xf32> to vector<12x1xf32>
    %7 = vector.extract_strided_slice %1 {offsets = [0, 27], sizes = [12, 1], strides = [1, 1]} : vector<12x28xf32> to vector<12x1xf32>
    %cst = arith.constant dense<0.000000e+00> : vector<12x128xf32>
    %8 = tpu.matmul %5, %3, %cst {dimension_numbers = #tpu.dot_dimension_numbers<[1], [0], [0], [1], [0, 0, 1, 1], [], []>} : vector<12x14xf32>, vector<14x128xf32>, vector<12x128xf32> -> vector<12x128xf32>
    %9 = vector.shape_cast %6 : vector<12x1xf32> to vector<12x1xf32>
    %10 = vector.broadcast %9 : vector<12x1xf32> to vector<12x128xf32>
    %11 = vector.shape_cast %7 : vector<12x1xf32> to vector<12x1xf32>
    %12 = vector.broadcast %11 : vector<12x1xf32> to vector<12x128xf32>
    %cst_3 = arith.constant 0.000000e+00 : f32
    %13 = vector.broadcast %cst_3 : f32 to vector<12x128xf32>
    %14 = arith.subf %2, %13 : vector<12x128xf32>
    %cst_4 = arith.constant dense<0.000000e+00> : vector<12x128xf32>
    %15 = tpu.matmul %4, %14, %cst_4 {dimension_numbers = #tpu.dot_dimension_numbers<[1], [0], [0], [1], [0, 0, 1, 1], [], []>} : vector<12x12xf32>, vector<12x128xf32>, vector<12x128xf32> -> vector<12x128xf32>
    %16 = arith.addf %15, %8 : vector<12x128xf32>
    %17 = arith.addf %16, %13 : vector<12x128xf32>
    %18 = arith.maximumf %17, %10 : vector<12x128xf32>
    %19 = arith.minimumf %18, %12 : vector<12x128xf32>
    %20 = arith.subf %17, %19 : vector<12x128xf32>
    %21 = arith.subf %19, %20 : vector<12x128xf32>
    %cst_5 = arith.constant dense<0.000000e+00> : vector<12x128xf32>
    %22 = tpu.matmul %4, %21, %cst_5 {dimension_numbers = #tpu.dot_dimension_numbers<[1], [0], [0], [1], [0, 0, 1, 1], [], []>} : vector<12x12xf32>, vector<12x128xf32>, vector<12x128xf32> -> vector<12x128xf32>
    %23 = arith.addf %22, %8 : vector<12x128xf32>
    %24 = arith.addf %23, %20 : vector<12x128xf32>
    %25 = arith.maximumf %24, %10 : vector<12x128xf32>
    %26 = arith.minimumf %25, %12 : vector<12x128xf32>
    %27 = arith.subf %24, %26 : vector<12x128xf32>
    %28 = arith.subf %26, %27 : vector<12x128xf32>
    %cst_6 = arith.constant dense<0.000000e+00> : vector<12x128xf32>
    %29 = tpu.matmul %4, %28, %cst_6 {dimension_numbers = #tpu.dot_dimension_numbers<[1], [0], [0], [1], [0, 0, 1, 1], [], []>} : vector<12x12xf32>, vector<12x128xf32>, vector<12x128xf32> -> vector<12x128xf32>
    %30 = arith.addf %29, %8 : vector<12x128xf32>
    %31 = arith.addf %30, %27 : vector<12x128xf32>
    %32 = arith.maximumf %31, %10 : vector<12x128xf32>
    %33 = arith.minimumf %32, %12 : vector<12x128xf32>
    %34 = arith.subf %30, %33 : vector<12x128xf32>
    %35 = arith.subf %33, %26 : vector<12x128xf32>
    %c0_7 = arith.constant 0 : index
    %c0_8 = arith.constant 0 : index
    %36 = vector.load %arg3[%c0_7, %c0_8] : memref<12x128xf32, #tpu.memory_space<vmem>>, vector<12x128xf32>
    tpu.vector_store %arg3[%c0_7, %c0_8], %30 {strides = array<i32>} : memref<12x128xf32, #tpu.memory_space<vmem>>, vector<12x128xf32>,
    %37 = arith.mulf %34, %34 : vector<12x128xf32>
    %38 = arith.mulf %35, %35 : vector<12x128xf32>
    %39 = arith.addf %37, %38 : vector<12x128xf32>
    %c0_9 = arith.constant 0 : index
    %c0_10 = arith.constant 0 : index
    %40 = vector.load %arg4[%c0_9, %c0_10] : memref<12x128xf32, #tpu.memory_space<vmem>>, vector<12x128xf32>
    tpu.vector_store %arg4[%c0_9, %c0_10], %39 {strides = array<i32>} : memref<12x128xf32, #tpu.memory_space<vmem>>, vector<12x128xf32>,
    return
  }
  func.func @transform_0(%arg0: i32) -> (i32, i32) {
    %c0_i32 = arith.constant 0 : i32
    %c0_i32_0 = arith.constant 0 : i32
    %c0_i32_1 = arith.constant 0 : i32
    return %c0_i32, %c0_i32_0 : i32, i32
  }
  func.func @transform_1(%arg0: i32) -> (i32, i32) {
    %c0_i32 = arith.constant 0 : i32
    %c0_i32_0 = arith.constant 0 : i32
    %c0_i32_1 = arith.constant 0 : i32
    return %c0_i32, %c0_i32_0 : i32, i32
  }
  func.func @transform_2(%arg0: i32) -> (i32, i32) {
    %c0_i32 = arith.constant 0 : i32
    %c0_i32_0 = arith.constant 0 : i32
    %c0_i32_1 = arith.constant 0 : i32
    return %c0_i32, %c0_i32_0 : i32, i32
  }
  func.func @transform_3(%arg0: i32) -> (i32, i32) {
    %c0_i32 = arith.constant 0 : i32
    %c0_i32_0 = arith.constant 0 : i32
    %c0_i32_1 = arith.constant 0 : i32
    return %c0_i32, %c0_i32_0 : i32, i32
  }
}

</mosaic_0001>

<bundles_post_ra>
// kernel: tpu_custom_call.1
= control target key start
LH: loop header
LB: loop body
LE: loop exit
PB: predicated region body
PF: predicated region fallthrough
CT: control target
= control target key end

     0   :  { %9 = vsyncpa [#allocation3], 0  ;;  %s800_s0 = inlined_call_operand.hbm [shape: f32[26,128], index: 0, kind: input, shape index: {}]   ;;  %s801_s1 = inlined_call_operand.hbm [shape: f32[12,28], index: 1, kind: input, shape index: {}]   ;;  %s802_s2 = inlined_call_operand.hbm [shape: f32[12,128], index: 2, kind: output, shape index: {0}]   ;;  %s803_s3 = inlined_call_operand.hbm [shape: f32[12,128], index: 3, kind: output, shape index: {1}]  }
   0x1   :  { %10 = vsyncpa [#allocation6], 0 }
   0x2   :  { %11 = vsyncpa [#allocation4], 0 }
   0x3   :  { %12 = vsyncpa [#allocation9], 0  ;;  %s665_s12 = smov [#allocation2]   ;;  %s569_s16 = scalar_lea.hbm %s800_s0, 512 }
   0x4   :  { %s18_s13 = sshll.u32 %s665_s12, 4  ;;  %p570_p0 = scmp.ne.s32.totalorder %s800_s0, %s569_s16  ;;  %s19_s13 = int_to_ptr.vmem [resolvable:$true] %s18_s13 }
   0x5   :  { %p573_p1 = scmp.lt.u32.totalorder %s569_s16, %s800_s0 }
   0x7   :  { %p575_p2 = pnand %p573_p1, %p570_p0 }
   0x9   :  { %578 = shalt.err (!%p575_p2)
}
   0xa   :  { %s579_s21 = scalar_lea.vmem %s19_s13, 512  ;;  %p584_p4 = scmp.lt.s32.totalorder %s19_s13, %s19_s13 }
   0xb   :  { %p580_p3 = scmp.ne.s32.totalorder %s19_s13, %s579_s21  ;;  %p585_p5 = scmp.lt.s32.totalorder %s579_s21, %s579_s21 }
   0xd   :  { %p586_p6 = por %p585_p5, %p584_p4 }
   0xf   :  { %p587_p7 = pnand %p586_p6, %p580_p3 }
  0x11   :  { %590 = shalt.err (!%p587_p7)
}
  0x12   :  { %s666_s22 = smov 128   ;;  %s667_s23 = smov 8  }
  0x13   :  { %24 = dma.hbm_to_vmem [thread:$0]  %s800_s0, 512, %s19_s13, [#allocation3], %s666_s22, %s666_s22, %s667_s23  }
  0x14   :  { %s668_s26 = smov [#allocation5]   ;;  %s591_s30 = scalar_lea.hbm %s801_s1, 256 }
  0x15   :  { %s30_s27 = sshll.u32 %s668_s26, 4  ;;  %p592_p8 = scmp.ne.s32.totalorder %s801_s1, %s591_s30  ;;  %s31_s27 = int_to_ptr.vmem [resolvable:$true] %s30_s27 }
  0x16   :  { %p595_p9 = scmp.lt.u32.totalorder %s591_s30, %s801_s1 }
  0x18   :  { %p597_p10 = pnand %p595_p9, %p592_p8 }
  0x1a   :  { %600 = shalt.err (!%p597_p10)
}
  0x1b   :  { %s601_s8 = scalar_lea.vmem %s31_s27, 256  ;;  %p606_p12 = scmp.lt.s32.totalorder %s31_s27, %s31_s27 }
  0x1c   :  { %p602_p11 = scmp.ne.s32.totalorder %s31_s27, %s601_s8  ;;  %p607_p13 = scmp.lt.s32.totalorder %s601_s8, %s601_s8 }
  0x1e   :  { %p608_p0 = por %p607_p13, %p606_p12 }
  0x20   :  { %p609_p1 = pnand %p608_p0, %p602_p11 }
  0x22   :  { %612 = shalt.err (!%p609_p1)
}
  0x23   :  { %36 = dma.hbm_to_vmem [thread:$0]  %s801_s1, 256, %s31_s27, [#allocation6], %s666_s22, %s666_s22, %s667_s23  }
  0x24   :  { %657 = dma.done.wait [#allocation3], 512  }
  0x25   :  { %658 = vsyncadd [#allocation3], 4294966784 }
  0x26   :  { %659 = dma.done.wait [#allocation6], 256  }
  0x27   :  { %660 = vsyncadd [#allocation6], 4294967040  ;;  %v669_v0 = vmov 26   ;;  %v670_v1 = vmov 27   ;;  %vm58_vm0 = vcmask 1043456   ;;  %vm164_vm1 = vcmask 97280  }
  0x28   :  { %566 = vset.pattern.permute.xlu1 %v669_v0  ;;  %567 = vset.pattern.permute.xlu0 %v670_v1  ;;  %v47_v2 = vld [vmem:[#allocation5] sm:$0xff]  ;;  %vm671_vm2 = vmmov 1   ;;  %s672_s1 = smov 116   ;;  %v44_v5 = vld [vmem:[#allocation2 + $0x8] sm:$0xff]  ;;  %v45_v6 = vld [vmem:[#allocation2 + $0x10] sm:$0xff]  ;;  %vm70_vm4 = vcmask 1045504  }
  0x29   :  { %v43_v3 = vld [vmem:[#allocation2] sm:$0xff]  ;;  %vm727_vm3 = vmpackc.low %vm58_vm0, %vm671_vm2  ;;  %51 = vrot.lane.b32.xlu0 %v47_v2, %s672_s1  ;;  %v46_v7 = vld [vmem:[#allocation2 + $0x18] sm:$0x3]  ;;  %515 = vmatprep.mubr.msk.f32.mxu1 %vm164_vm1, %v47_v2  ;;  %v59_v9 = vrot.slane %v44_v5, 4  ;;  %v60_v11 = vrot.slane %v45_v6, 4  ;;  %vm65_vm6 = vcmask 113664  }
  0x2a   :  { %v732_v8 = vld [vmem:[#allocation5 + $0x8] sm:$0xf]  ;;  %v538_v10 = vpack.c.bf16 %v44_v5, %v43_v3  ;;  %v62_v12 = vrot.slane %v46_v7, 4  ;;  %149 = vperm.xlu1 %566, %v47_v2   ;;  %vm533_vm5 = vmpackc.low %vm70_vm4, %vm671_vm2  ;;  %s673_s10 = smov [#allocation7]  }
  0x2b   :  { %v61_v13 = vsel %vm58_vm0, %v59_v9, %v60_v11  ;;  %s447_s11 = sshll.u32 %s673_s10, 4  ;;  %s448_s11 = int_to_ptr.vmem [resolvable:$true] %s447_s11 }
  0x2c   :  { %540 = vmatprep.subr.msk.bf16.mxu1 %vm727_vm3, %v538_v10  ;;  %v63_v14 = vsel %vm58_vm0, %v60_v11, %v62_v12  ;;  %s613_s12 = scalar_lea.vmem %s448_s11, 256  ;;  %p618_p3 = scmp.lt.s32.totalorder %s448_s11, %s448_s11 }
  0x2d   :  { %53 = vrot.lane.b32.xlu0 %v732_v8, %s672_s1  ;;  %v532_v15 = vpack.c.bf16 %v63_v14, %v61_v13  ;;  %543 = vmatpush3.bf16.msk.msra.mxu1 %vm727_vm3, %v538_v10  ;;  %p614_p2 = scmp.ne.s32.totalorder %s448_s11, %s613_s12  ;;  %p619_p4 = scmp.lt.s32.totalorder %s613_s12, %s613_s12 }
  0x2e   :  { %153 = vperm.xlu1 %566, %v732_v8  }
  0x2f   :  { %534 = vmatprep.subr.msk.bf16.mxu0 %vm533_vm5, %v532_v15  ;;  %p620_p5 = por %p619_p4, %p618_p3 }
  0x30   :  { %537 = vmatpush3.bf16.msk.msra.mxu0 %vm533_vm5, %v532_v15  ;;  %516 = vmatmul.mubr.msk.f32.vlgmr.msra.gmra.mrb[0].mxu1 %vm164_vm1, %v732_v8 }
  0x31   :  { %157 = vperm.xlu0 %567, %v47_v2   ;;  %529 = vmatprep.mubr.msk.f32.mxu1 %vm164_vm1, %v47_v2  ;;  %p621_p6 = pnand %p620_p5, %p614_p2 }
  0x32   :  { %568 = vset.pattern.permute.xlu1 %v670_v1 }
  0x33   :  { %161 = vperm.xlu1 %568, %v732_v8  }
  0x9b   :  { %v52_v16 = vpop.permute.xlu0 %51 }
  0x9c   :  { %508 = vmatprep.mubr.msk.f32.mxu0 %vm65_vm6, %v52_v16 }
  0x9f   :  { %v54_v17 = vpop.permute.xlu0 %53 }
  0xa0   :  { %509 = vmatmul.mubr.msk.f32.vlgmr.msra.gmra.mrb[0].mxu0 %vm65_vm6, %v54_v17 }
  0xa1   :  { %522 = vmatprep.mubr.msk.f32.mxu0 %vm164_vm1, %v47_v2 }
  0xa9   :  { %v748_v20 = vpop.permute.xlu1 %149 }
  0xad   :  { %v750_v21 = vpop.permute.xlu1 %153 }
  0xb0   :  { %v158_v28 = vpop.permute.xlu0 %157 }
  0xb2   :  { %v162_v26 = vpop.permute.xlu1 %161 }
 0x103   :  { %v517_v18 = vpop.f32.mrb[0].mxu1 }
 0x104   :  { %v237_v19 = vpop.f32.mrb[1].mxu1 }
 0x173   :  { %v510_v22 = vpop.f32.mrb[0].mxu0 }
 0x174   :  { %v243_v23 = vadd.f32 %v517_v18, %v510_v22  ;;  %v139_v24 = vpop.f32.mrb[1].mxu0 }
 0x175   :  { %v238_v25 = vadd.f32 %v237_v19, %v139_v24 }
 0x176   :  { %v249_v27 = vmax.f32 %v243_v23, %v750_v21 }
 0x177   :  { %v248_v29 = vmax.f32 %v238_v25, %v748_v20 }
 0x178   :  { %v251_v30 = vmin.f32 %v249_v27, %v162_v26 }
 0x179   :  { %v250_v31 = vmin.f32 %v248_v29, %v158_v28 }
 0x17a   :  { %v253_v32 = vsub.f32 %v243_v23, %v251_v30 }
 0x17b   :  { %v252_v33 = vsub.f32 %v238_v25, %v250_v31 }
 0x17c   :  { %v255_v34 = vsub.f32 %v251_v30, %v253_v32 }
 0x17d   :  { %v254_v35 = vsub.f32 %v250_v31, %v252_v33 }
 0x17f   :  { %v544_v36 = vpack.c.bf16 %v255_v34, %v254_v35 }
 0x181   :  { %546 = vmatprep.subr.msk.bf16.mxu0 %vm727_vm3, %v544_v36 }
 0x182   :  { %549 = vmatpush3.bf16.msk.msra.mxu0 %vm727_vm3, %v544_v36 }
 0x185   :  { %523 = vmatmul.mubr.msk.f32.vlgmr.msra.gmra.mrb[2].mxu0 %vm164_vm1, %v732_v8 }
 0x258   :  { %v524_v37 = vpop.f32.mrb[2].mxu0 }
 0x259   :  { %v331_v38 = vadd.f32 %v524_v37, %v510_v22  ;;  %v325_v39 = vpop.f32.mrb[3].mxu0 }
 0x25a   :  { %v326_v40 = vadd.f32 %v325_v39, %v139_v24 }
 0x25b   :  { %v335_v41 = vadd.f32 %v331_v38, %v253_v32 }
 0x25c   :  { %v334_v42 = vadd.f32 %v326_v40, %v252_v33 }
 0x25d   :  { %v337_v43 = vmax.f32 %v335_v41, %v750_v21 }
 0x25e   :  { %v336_v44 = vmax.f32 %v334_v42, %v748_v20 }
 0x25f   :  { %v339_v45 = vmin.f32 %v337_v43, %v162_v26 }
 0x260   :  { %v338_v46 = vmin.f32 %v336_v44, %v158_v28 }
 0x261   :  { %v341_v47 = vsub.f32 %v335_v41, %v339_v45 }
 0x262   :  { %v340_v48 = vsub.f32 %v334_v42, %v338_v46 }
 0x263   :  { %v343_v49 = vsub.f32 %v339_v45, %v341_v47 }
 0x264   :  { %v342_v50 = vsub.f32 %v338_v46, %v340_v48 }
 0x266   :  { %v550_v51 = vpack.c.bf16 %v343_v49, %v342_v50 }
 0x268   :  { %552 = vmatprep.subr.msk.bf16.mxu1 %vm727_vm3, %v550_v51 }
 0x269   :  { %555 = vmatpush3.bf16.msk.msra.mxu1 %vm727_vm3, %v550_v51 }
 0x26c   :  { %530 = vmatmul.mubr.msk.f32.vlgmr.msra.gmra.mrb[2].mxu1 %vm164_vm1, %v732_v8 }
 0x33f   :  { %v531_v52 = vpop.f32.mrb[2].mxu1 }
 0x340   :  { %v419_v53 = vadd.f32 %v531_v52, %v510_v22  ;;  %v413_v54 = vpop.f32.mrb[3].mxu1 }
 0x341   :  { %v414_v55 = vadd.f32 %v413_v54, %v139_v24 }
 0x342   :  { %v423_v56 = vadd.f32 %v419_v53, %v341_v47  ;;  %433 = vst [vmem:[#allocation7 + $0x8] sm:$0xf] %v419_v53 }
 0x343   :  { %v422_v57 = vadd.f32 %v414_v55, %v340_v48  ;;  %432 = vst [vmem:[#allocation7] sm:$0xff] %v414_v55 }
 0x344   :  { %v425_v58 = vmax.f32 %v423_v56, %v750_v21 }
 0x345   :  { %624 = shalt.err (!%p621_p6)
}
 0x346   :  { %s625_s15 = scalar_lea.hbm %s802_s2, 256 }
 0x347   :  { %p626_p7 = scmp.ne.s32.totalorder %s802_s2, %s625_s15  ;;  %p629_p8 = scmp.lt.u32.totalorder %s625_s15, %s802_s2 }
 0x349   :  { %p631_p9 = pnand %p629_p8, %p626_p7 }
 0x34b   :  { %634 = shalt.err (!%p631_p9)
}
 0x34c   :  { %453 = dma.vmem_to_hbm [thread:$0]  %s448_s11, 256, %s802_s2, [#allocation4], %s666_s22, %s666_s22, %s667_s23   ;;  %v424_v59 = vmax.f32 %v422_v57, %v748_v20  ;;  %v427_v60 = vmin.f32 %v425_v58, %v162_v26 }
 0x34d   :  { %s674_s24 = smov [#allocation8]  }
 0x34e   :  { %v426_v61 = vmin.f32 %v424_v59, %v158_v28  ;;  %v429_v62 = vsub.f32 %v419_v53, %v427_v60  ;;  %v431_v63 = vsub.f32 %v427_v60, %v339_v45  ;;  %s459_s25 = sshll.u32 %s674_s24, 4  ;;  %s460_s25 = int_to_ptr.vmem [resolvable:$true] %s459_s25 }
 0x34f   :  { %s635_s2 = scalar_lea.vmem %s460_s25, 256  ;;  %p640_p11 = scmp.lt.s32.totalorder %s460_s25, %s460_s25 }
 0x350   :  { %v428_v0 = vsub.f32 %v414_v55, %v426_v61  ;;  %v430_v1 = vsub.f32 %v426_v61, %v338_v46  ;;  %v435_v2 = vmul.f32 %v429_v62, %v429_v62  ;;  %v437_v3 = vmul.f32 %v431_v63, %v431_v63  ;;  %p636_p10 = scmp.ne.s32.totalorder %s460_s25, %s635_s2  ;;  %p641_p12 = scmp.lt.s32.totalorder %s635_s2, %s635_s2 }
 0x352   :  { %v434_v4 = vmul.f32 %v428_v0, %v428_v0  ;;  %v436_v5 = vmul.f32 %v430_v1, %v430_v1  ;;  %v439_v6 = vadd.f32 %v437_v3, %v435_v2  ;;  %p642_p13 = por %p641_p12, %p640_p11 }
 0x354   :  { %v438_v7 = vadd.f32 %v436_v5, %v434_v4  ;;  %441 = vst [vmem:[#allocation8 + $0x8] sm:$0xf] %v439_v6  ;;  %p643_p0 = pnand %p642_p13, %p636_p10 }
 0x356   :  { %440 = vst [vmem:[#allocation8] sm:$0xff] %v438_v7 }
 0x357   :  { %646 = shalt.err (!%p643_p0)
}
 0x358   :  { %s647_s28 = scalar_lea.hbm %s803_s3, 256 }
 0x359   :  { %p648_p1 = scmp.ne.s32.totalorder %s803_s3, %s647_s28  ;;  %p651_p2 = scmp.lt.u32.totalorder %s647_s28, %s803_s3 }
 0x35b   :  { %p653_p3 = pnand %p651_p2, %p648_p1 }
 0x35d   :  { %656 = shalt.err (!%p653_p3)
}
 0x35e   :  { %465 = dma.vmem_to_hbm [thread:$0]  %s460_s25, 256, %s803_s3, [#allocation9], %s666_s22, %s666_s22, %s667_s23  }
 0x35f   :  { %661 = dma.done.wait [#allocation4], 256  }
 0x360   :  { %662 = vsyncadd [#allocation4], 4294967040 }
 0x361   :  { %663 = dma.done.wait [#allocation9], 256  }
 0x362   :  { %664 = vsyncadd [#allocation9], 4294967040 }
 0x363   :  { %472 = vsyncpa [#allocation3], 1 }
 0x364   :  { %473 = vsyncpa [#allocation6], 1 }
 0x365   :  { %474 = vsyncpa [#allocation4], 1 }
 0x366   :  { %475 = vsyncpa [#allocation9], 1 }

</bundles_post_ra>
